<compile_context>
chip_gen: v5e
topology: v5e:2x2
jax: 0.10.0
libtpu: 0.0.40
codegen_flags: <defaults>
</compile_context>

<pallas_src>
import jax
import jax.numpy as jnp
from jax.experimental import pallas as pl
from jax.experimental.pallas import tpu as pltpu


def _extrader_kernel(x_ref,
                     w1_ref, b1_ref,
                     w2_ref, b2_ref,
                     w3_ref, b3_ref,
                     w4_ref, b4_ref,
                     o_ref):
    bf16 = jnp.bfloat16
    # Input block -> bf16 MXU operand (no-op if the caller already passed bf16).
    x = x_ref[...].astype(bf16)

    # Layer 1: Linear(in, 64) -> (Dropout: identity) -> Tanh
    h = jnp.dot(x, w1_ref[...], preferred_element_type=jnp.float32)
    h = jnp.tanh(h + b1_ref[...]).astype(bf16)
    # Layer 2: Linear(64, 64) -> (Dropout: identity) -> Tanh
    h = jnp.dot(h, w2_ref[...], preferred_element_type=jnp.float32)
    h = jnp.tanh(h + b2_ref[...]).astype(bf16)
    # Layer 3: Linear(64, 64) -> (Dropout: identity) -> Tanh
    h = jnp.dot(h, w3_ref[...], preferred_element_type=jnp.float32)
    h = jnp.tanh(h + b3_ref[...]).astype(bf16)
    # Layer 4: Linear(hidden=64, out), no activation.  f32 accumulate + store.
    out = jnp.dot(h, w4_ref[...], preferred_element_type=jnp.float32)
    o_ref[...] = (out + b4_ref[...]).astype(o_ref.dtype)


def extrader_forward(x, params, *, batch_tile=4096):
    """x: [B, input_size] float32 or bfloat16.  params: list of (w, b) per layer.

    batch_tile: max rows per grid step.  Large tiles (2K-8K) amortize the
    ~0.35us/step pipeline overhead; the tile is additionally capped at ~half
    the batch so >=2 grid steps exist for v7x's two TensorCores.
    """
    (w1, b1), (w2, b2), (w3, b3), (w4, b4) = params
    # The PyTorch module only composes when hidden_size == 64.
    assert w3.shape[1] == w4.shape[0], "hidden_size must equal 64 for this model"

    B, F = x.shape
    out_size = w4.shape[1]

    # bf16 weights for the MXU; f32 biases (added to the f32 accumulator).
    w1, w2, w3, w4 = (w.astype(jnp.bfloat16) for w in (w1, w2, w3, w4))
    b1, b2, b3, b4 = (b.astype(jnp.float32).reshape(1, -1) for b in (b1, b2, b3, b4))

    # Sublane-aligned (multiple of 8) batch tile.  For any batch with at least
    # two sublane rows of work, cap the tile at ~half the batch so the 1-D
    # grid has >= 2 steps (keeps both v7x TensorCores busy; neutral elsewhere).
    b_aligned = ((B + 7) // 8) * 8
    if b_aligned >= 16:
        two_way = ((pl.cdiv(b_aligned, 2) + 7) // 8) * 8
        tb = min(batch_tile, two_way)
    else:
        tb = b_aligned
    tb = max(8, ((tb + 7) // 8) * 8)

    grid_b = pl.cdiv(b_aligned, tb)
    b_pad = grid_b * tb
    if b_pad != B:
        x = jnp.pad(x, ((0, b_pad - B), (0, 0)))

    # Weights / biases: whole-array blocks with a constant block index -> they
    # are DMAed once and stay VMEM-resident for every batch tile.
    def resident(a):
        return pl.BlockSpec(a.shape, lambda i: (0,) * a.ndim)

    out = pl.pallas_call(
        _extrader_kernel,
        out_shape=jax.ShapeDtypeStruct((b_pad, out_size), jnp.float32),
        grid=(grid_b,),
        in_specs=[pl.BlockSpec((tb, F), lambda i: (i, 0)),
                  resident(w1), resident(b1),
                  resident(w2), resident(b2),
                  resident(w3), resident(b3),
                  resident(w4), resident(b4)],
        out_specs=pl.BlockSpec((tb, out_size), lambda i: (i, 0)),
        compiler_params=pltpu.CompilerParams(
            dimension_semantics=("parallel",),
            vmem_limit_bytes=32 * 1024 * 1024),
    )(x, w1, b1, w2, b2, w3, b3, w4, b4)

    return out[:B]


def init_params(key, input_size, hidden_size, output_size):
    """PyTorch-Linear-style init: U(-1/sqrt(fan_in), 1/sqrt(fan_in)).
    Weights are stored transposed ([in, out]) relative to nn.Linear."""
    assert hidden_size == 64, "Extrader only composes when hidden_size == 64"
    dims = [(input_size, 64), (64, 64), (64, 64), (hidden_size, output_size)]
    params = []
    for (fan_in, fan_out) in dims:
        key, kw, kb = jax.random.split(key, 3)
        bound = 1.0 / (fan_in ** 0.5)
        w = jax.random.uniform(kw, (fan_in, fan_out), jnp.float32, -bound, bound)
        b = jax.random.uniform(kb, (1, fan_out), jnp.float32, -bound, bound)
        params.append((w, b))
    return params


def reference_forward_f32(x, params):
    """Pure-JAX f32 reference (eval mode: dropout = identity)."""
    (w1, b1), (w2, b2), (w3, b3), (w4, b4) = params
    h = jnp.tanh(x @ w1 + b1)
    h = jnp.tanh(h @ w2 + b2)
    h = jnp.tanh(h @ w3 + b3)
    return h @ w4 + b4


def reference_forward_mixed(x, params):
    """Pure-JAX reference matching the kernel's precision recipe:
    bf16 matmul operands, f32 accumulation, f32 bias-add + tanh, bf16 recast."""
    (w1, b1), (w2, b2), (w3, b3), (w4, b4) = params
    bf16 = jnp.bfloat16
    h = x.astype(bf16)
    for (w, b) in ((w1, b1), (w2, b2), (w3, b3)):
        z = jnp.dot(h, w.astype(bf16), preferred_element_type=jnp.float32) + b
        h = jnp.tanh(z).astype(bf16)
    return jnp.dot(h, w4.astype(bf16), preferred_element_type=jnp.float32) + b4


def _check(out, x_f32, params, name):
    # Primary: against the precision-matched reference (differences only from
    # EUP-vs-XLA tanh approximations and rounding order -> small).
    ref_mixed = reference_forward_mixed(x_f32, params)
    assert bool(jnp.allclose(out, ref_mixed, atol=5e-2, rtol=5e-2)), \
        f"mismatch vs mixed-precision reference ({name})"
    # Sanity: against the exact f32 reference (bf16-operand noise is expected).
    ref_f32 = reference_forward_f32(x_f32, params)
    assert bool(jnp.allclose(out, ref_f32, atol=0.25, rtol=0.1)), \
        f"mismatch vs f32 reference ({name})"


if __name__ == "__main__":
    input_size = 32
    hidden_size = 64   # must be 64 for the PyTorch module to compose
    output_size = 16

    key = jax.random.PRNGKey(0)
    key, kx1, kx2, kx3 = jax.random.split(key, 4)
    params = init_params(key, input_size, hidden_size, output_size)

    # 1) Small batch: single grid step, f32 input.
    x_small = jax.random.normal(kx1, (8, input_size), jnp.float32)
    out_small = jax.block_until_ready(extrader_forward(x_small, params))
    assert out_small.shape == (8, output_size)
    _check(out_small, x_small, params, "small batch")

    # 2) Ragged batch, tiny tile, bf16 input stream (multi-step grid + tail pad).
    x_rag_f32 = jax.random.normal(kx2, (20, input_size), jnp.float32)
    x_rag_bf16 = x_rag_f32.astype(jnp.bfloat16)
    out_rag = jax.block_until_ready(
        extrader_forward(x_rag_bf16, params, batch_tile=8))
    assert out_rag.shape == (20, output_size)
    _check(out_rag, x_rag_bf16.astype(jnp.float32), params, "ragged batch")

    # 3) Default-tile path: batch large enough to force a >= 2-step grid
    #    (exercises the v7x two-TensorCore tiling heuristic).
    x_med = jax.random.normal(kx3, (1000, input_size), jnp.float32)
    out_med = jax.block_until_ready(extrader_forward(x_med, params))
    assert out_med.shape == (1000, output_size)
    _check(out_med, x_med, params, "medium batch")

    print("KERNEL_OK")
</pallas_src>

<mosaic_0001>
module attributes {stable_mosaic.version = 11 : i64} {
  func.func @_extrader_kernel(%arg0: i32, %arg1: memref<8x32xf32, #tpu.memory_space<vmem>>, %arg2: memref<32x64xbf16, #tpu.memory_space<vmem>>, %arg3: memref<1x64xf32, #tpu.memory_space<vmem>>, %arg4: memref<64x64xbf16, #tpu.memory_space<vmem>>, %arg5: memref<1x64xf32, #tpu.memory_space<vmem>>, %arg6: memref<64x64xbf16, #tpu.memory_space<vmem>>, %arg7: memref<1x64xf32, #tpu.memory_space<vmem>>, %arg8: memref<64x16xbf16, #tpu.memory_space<vmem>>, %arg9: memref<1x16xf32, #tpu.memory_space<vmem>>, %arg10: memref<8x16xf32, #tpu.memory_space<vmem>>) attributes {dimension_semantics = [#tpu.dimension_semantics<parallel>], iteration_bounds = array<i64: 1>, scalar_prefetch = 0 : i64, scratch_operands = 0 : i64, tpu.core_type = #tpu.core_type<tc>, window_params = [{transform_indices = @transform_0, window_bounds = array<i64: 8, 32>}, {pipeline_mode = #tpu.pipeline_mode<synchronous>, transform_indices = @transform_1, window_bounds = array<i64: 32, 64>}, {pipeline_mode = #tpu.pipeline_mode<synchronous>, transform_indices = @transform_2, window_bounds = array<i64: 1, 64>}, {pipeline_mode = #tpu.pipeline_mode<synchronous>, transform_indices = @transform_3, window_bounds = array<i64: 64, 64>}, {pipeline_mode = #tpu.pipeline_mode<synchronous>, transform_indices = @transform_4, window_bounds = array<i64: 1, 64>}, {pipeline_mode = #tpu.pipeline_mode<synchronous>, transform_indices = @transform_5, window_bounds = array<i64: 64, 64>}, {pipeline_mode = #tpu.pipeline_mode<synchronous>, transform_indices = @transform_6, window_bounds = array<i64: 1, 64>}, {pipeline_mode = #tpu.pipeline_mode<synchronous>, transform_indices = @transform_7, window_bounds = array<i64: 64, 16>}, {pipeline_mode = #tpu.pipeline_mode<synchronous>, transform_indices = @transform_8, window_bounds = array<i64: 1, 16>}, {transform_indices = @transform_9, window_bounds = array<i64: 8, 16>}]} {
    %c0 = arith.constant 0 : index
    %c0_0 = arith.constant 0 : index
    %0 = vector.load %arg1[%c0, %c0_0] : memref<8x32xf32, #tpu.memory_space<vmem>>, vector<8x32xf32>
    %1 = arith.truncf %0 : vector<8x32xf32> to vector<8x32xbf16>
    %c0_1 = arith.constant 0 : index
    %c0_2 = arith.constant 0 : index
    %2 = vector.load %arg2[%c0_1, %c0_2] : memref<32x64xbf16, #tpu.memory_space<vmem>>, vector<32x64xbf16>
    %cst = arith.constant dense<0.000000e+00> : vector<8x64xf32>
    %3 = tpu.matmul %1, %2, %cst {dimension_numbers = #tpu.dot_dimension_numbers<[1], [0], [0], [1], [0, 0, 1, 1], [], []>} : vector<8x32xbf16>, vector<32x64xbf16>, vector<8x64xf32> -> vector<8x64xf32>
    %c0_3 = arith.constant 0 : index
    %c0_4 = arith.constant 0 : index
    %4 = vector.load %arg3[%c0_3, %c0_4] : memref<1x64xf32, #tpu.memory_space<vmem>>, vector<1x64xf32>
    %5 = vector.broadcast %4 : vector<1x64xf32> to vector<8x64xf32>
    %6 = arith.addf %3, %5 : vector<8x64xf32>
    %7 = math.tanh %6 : vector<8x64xf32>
    %8 = arith.truncf %7 : vector<8x64xf32> to vector<8x64xbf16>
    %c0_5 = arith.constant 0 : index
    %c0_6 = arith.constant 0 : index
    %9 = vector.load %arg4[%c0_5, %c0_6] : memref<64x64xbf16, #tpu.memory_space<vmem>>, vector<64x64xbf16>
    %cst_7 = arith.constant dense<0.000000e+00> : vector<8x64xf32>
    %10 = tpu.matmul %8, %9, %cst_7 {dimension_numbers = #tpu.dot_dimension_numbers<[1], [0], [0], [1], [0, 0, 1, 1], [], []>} : vector<8x64xbf16>, vector<64x64xbf16>, vector<8x64xf32> -> vector<8x64xf32>
    %c0_8 = arith.constant 0 : index
    %c0_9 = arith.constant 0 : index
    %11 = vector.load %arg5[%c0_8, %c0_9] : memref<1x64xf32, #tpu.memory_space<vmem>>, vector<1x64xf32>
    %12 = vector.broadcast %11 : vector<1x64xf32> to vector<8x64xf32>
    %13 = arith.addf %10, %12 : vector<8x64xf32>
    %14 = math.tanh %13 : vector<8x64xf32>
    %15 = arith.truncf %14 : vector<8x64xf32> to vector<8x64xbf16>
    %c0_10 = arith.constant 0 : index
    %c0_11 = arith.constant 0 : index
    %16 = vector.load %arg6[%c0_10, %c0_11] : memref<64x64xbf16, #tpu.memory_space<vmem>>, vector<64x64xbf16>
    %cst_12 = arith.constant dense<0.000000e+00> : vector<8x64xf32>
    %17 = tpu.matmul %15, %16, %cst_12 {dimension_numbers = #tpu.dot_dimension_numbers<[1], [0], [0], [1], [0, 0, 1, 1], [], []>} : vector<8x64xbf16>, vector<64x64xbf16>, vector<8x64xf32> -> vector<8x64xf32>
    %c0_13 = arith.constant 0 : index
    %c0_14 = arith.constant 0 : index
    %18 = vector.load %arg7[%c0_13, %c0_14] : memref<1x64xf32, #tpu.memory_space<vmem>>, vector<1x64xf32>
    %19 = vector.broadcast %18 : vector<1x64xf32> to vector<8x64xf32>
    %20 = arith.addf %17, %19 : vector<8x64xf32>
    %21 = math.tanh %20 : vector<8x64xf32>
    %22 = arith.truncf %21 : vector<8x64xf32> to vector<8x64xbf16>
    %c0_15 = arith.constant 0 : index
    %c0_16 = arith.constant 0 : index
    %23 = vector.load %arg8[%c0_15, %c0_16] : memref<64x16xbf16, #tpu.memory_space<vmem>>, vector<64x16xbf16>
    %cst_17 = arith.constant dense<0.000000e+00> : vector<8x16xf32>
    %24 = tpu.matmul %22, %23, %cst_17 {dimension_numbers = #tpu.dot_dimension_numbers<[1], [0], [0], [1], [0, 0, 1, 1], [], []>} : vector<8x64xbf16>, vector<64x16xbf16>, vector<8x16xf32> -> vector<8x16xf32>
    %c0_18 = arith.constant 0 : index
    %c0_19 = arith.constant 0 : index
    %25 = vector.load %arg9[%c0_18, %c0_19] : memref<1x16xf32, #tpu.memory_space<vmem>>, vector<1x16xf32>
    %26 = vector.broadcast %25 : vector<1x16xf32> to vector<8x16xf32>
    %27 = arith.addf %24, %26 : vector<8x16xf32>
    %c0_20 = arith.constant 0 : index
    %c0_21 = arith.constant 0 : index
    %28 = vector.load %arg10[%c0_20, %c0_21] : memref<8x16xf32, #tpu.memory_space<vmem>>, vector<8x16xf32>
    tpu.vector_store %arg10[%c0_20, %c0_21], %27 {strides = array<i32>} : memref<8x16xf32, #tpu.memory_space<vmem>>, vector<8x16xf32>,
    return
  }
  func.func @transform_0(%arg0: i32) -> (i32, i32) {
    %c0_i32 = arith.constant 0 : i32
    %c0_i32_0 = arith.constant 0 : i32
    return %arg0, %c0_i32 : i32, i32
  }
  func.func @transform_1(%arg0: i32) -> (i32, i32) {
    %c0_i32 = arith.constant 0 : i32
    %c0_i32_0 = arith.constant 0 : i32
    %c0_i32_1 = arith.constant 0 : i32
    return %c0_i32, %c0_i32_0 : i32, i32
  }
  func.func @transform_2(%arg0: i32) -> (i32, i32) {
    %c0_i32 = arith.constant 0 : i32
    %c0_i32_0 = arith.constant 0 : i32
    %c0_i32_1 = arith.constant 0 : i32
    return %c0_i32, %c0_i32_0 : i32, i32
  }
  func.func @transform_3(%arg0: i32) -> (i32, i32) {
    %c0_i32 = arith.constant 0 : i32
    %c0_i32_0 = arith.constant 0 : i32
    %c0_i32_1 = arith.constant 0 : i32
    return %c0_i32, %c0_i32_0 : i32, i32
  }
  func.func @transform_4(%arg0: i32) -> (i32, i32) {
    %c0_i32 = arith.constant 0 : i32
    %c0_i32_0 = arith.constant 0 : i32
    %c0_i32_1 = arith.constant 0 : i32
    return %c0_i32, %c0_i32_0 : i32, i32
  }
  func.func @transform_5(%arg0: i32) -> (i32, i32) {
    %c0_i32 = arith.constant 0 : i32
    %c0_i32_0 = arith.constant 0 : i32
    %c0_i32_1 = arith.constant 0 : i32
    return %c0_i32, %c0_i32_0 : i32, i32
  }
  func.func @transform_6(%arg0: i32) -> (i32, i32) {
    %c0_i32 = arith.constant 0 : i32
    %c0_i32_0 = arith.constant 0 : i32
    %c0_i32_1 = arith.constant 0 : i32
    return %c0_i32, %c0_i32_0 : i32, i32
  }
  func.func @transform_7(%arg0: i32) -> (i32, i32) {
    %c0_i32 = arith.constant 0 : i32
    %c0_i32_0 = arith.constant 0 : i32
    %c0_i32_1 = arith.constant 0 : i32
    return %c0_i32, %c0_i32_0 : i32, i32
  }
  func.func @transform_8(%arg0: i32) -> (i32, i32) {
    %c0_i32 = arith.constant 0 : i32
    %c0_i32_0 = arith.constant 0 : i32
    %c0_i32_1 = arith.constant 0 : i32
    return %c0_i32, %c0_i32_0 : i32, i32
  }
  func.func @transform_9(%arg0: i32) -> (i32, i32) {
    %c0_i32 = arith.constant 0 : i32
    %c0_i32_0 = arith.constant 0 : i32
    return %arg0, %c0_i32 : i32, i32
  }
}

</mosaic_0001>

<bundles_post_ra>
// kernel: tpu_custom_call.1
= control target key start
LH: loop header
LB: loop body
LE: loop exit
PB: predicated region body
PF: predicated region fallthrough
CT: control target
= control target key end

     0   :  { %14 = vsyncpa [#allocation3], 0  ;;  %s561_s0 = inlined_call_operand.vmem [shape: f32[8,32], index: 0, kind: input, shape index: {}]   ;;  %s562_s1 = inlined_call_operand.hbm [shape: bf16[32,64], index: 1, kind: input, shape index: {}]   ;;  %s563_s2 = inlined_call_operand.vmem [shape: f32[1,64], index: 2, kind: input, shape index: {}]   ;;  %s564_s3 = inlined_call_operand.vmem [shape: bf16[64,64], index: 3, kind: input, shape index: {}]   ;;  %s565_s4 = inlined_call_operand.vmem [shape: f32[1,64], index: 4, kind: input, shape index: {}]   ;;  %s566_s5 = inlined_call_operand.hbm [shape: bf16[64,64], index: 5, kind: input, shape index: {}]   ;;  %s567_s6 = inlined_call_operand.vmem [shape: f32[1,64], index: 6, kind: input, shape index: {}]   ;;  %s568_s7 = inlined_call_operand.vmem [shape: bf16[64,16], index: 7, kind: input, shape index: {}]   ;;  %s569_s8 = inlined_call_operand.vmem [shape: f32[1,16], index: 8, kind: input, shape index: {}]   ;;  %s570_s9 = inlined_call_operand.hbm [shape: f32[8,16], index: 9, kind: output, shape index: {}]  }
   0x1   :  { %15 = vsyncpa [#allocation6], 0 }
   0x2   :  { %16 = vsyncpa [#allocation4], 0  ;;  %s23_s11 = sshll.u32 %s562_s1, 4  ;;  %s455_s12 = smov [#allocation2]   ;;  %s24_s11 = int_to_ptr.hbm [resolvable:$true] %s23_s11 }
   0x3   :  { %s25_s13 = sshll.u32 %s455_s12, 4  ;;  %s42_s16 = sshll.u32 %s566_s5, 4  ;;  %s26_s13 = int_to_ptr.vmem [resolvable:$true] %s25_s13  ;;  %s43_s16 = int_to_ptr.hbm [resolvable:$true] %s42_s16 }
   0x4   :  { %s456_s17 = smov 64   ;;  %s457_s18 = smov 4  }
   0x5   :  { %31 = dma.hbm_to_vmem [thread:$0]  %s24_s11, 256, %s26_s13, [#allocation3], %s456_s17, %s456_s17, %s457_s18  }
   0x6   :  { %s458_s19 = smov [#allocation5]  }
   0x7   :  { %s44_s20 = sshll.u32 %s458_s19, 4  ;;  %s45_s20 = int_to_ptr.vmem [resolvable:$true] %s44_s20 }
   0x8   :  { %50 = dma.hbm_to_vmem [thread:$0]  %s43_s16, 512, %s45_s20, [#allocation6], %s456_s17, %s456_s17, %s457_s18  }
   0x9   :  { %449 = dma.done.wait [#allocation3], 256  }
   0xa   :  { %450 = vsyncadd [#allocation3], 4294967040 }
   0xb   :  { %451 = dma.done.wait [#allocation6], 512  }
   0xc   :  { %452 = vsyncadd [#allocation6], 4294966784  ;;  %v349_v0 = vld [vmem:[#allocation2 + $0x8] sm:$0xff]  ;;  %v348_v1 = vld [vmem:[#allocation2] sm:$0xff]  ;;  %vm88_vm0 = vcmask 261120   ;;  %vm143_vm1 = vcmask 523264  }
   0xd   :  { %v66_v2 = vld [vmem:[%s561_s0] sm:$0xff]  ;;  %v353_v3 = vld [vmem:[%s564_s3 + $0x18] sm:$0xff]  ;;  %98 = vmatpush.bf16.msra.mxu0 %v349_v0  ;;  %v352_v5 = vld [vmem:[%s564_s3 + $0x10] sm:$0xff]  ;;  %s459_s20 = smov [#allocation7]   ;;  %s277_s22 = sshll.u32 %s570_s9, 4  ;;  %vm268_vm2 = vcmask 130048   ;;  %s278_s22 = int_to_ptr.hbm [resolvable:$true] %s277_s22 }
   0xe   :  { %151 = vmatpush.bf16.msra.mxu1 %v353_v3  ;;  %v67_v4 = vpack.c.bf16 %v66_v2, %v66_v2  ;;  %v351_v6 = vld [vmem:[%s564_s3 + $0x8] sm:$0xff]  ;;  %v350_v7 = vld [vmem:[%s564_s3] sm:$0xff]  ;;  %v355_v16 = vld [vmem:[#allocation5 + $0x8] sm:$0xff]  ;;  %s275_s1 = sshll.u32 %s459_s20, 4  ;;  %s276_s1 = int_to_ptr.vmem [resolvable:$true] %s275_s1 }
   0xf   :  { %v357_v8 = vld [vmem:[#allocation5 + $0x18] sm:$0xff]  ;;  %v367_v9 = vld [vmem:[%s563_s2] ss:$0 sm:$0xff]  ;;  %v354_v17 = vld [vmem:[#allocation5] sm:$0xff] }
  0x10   :  { %205 = vmatpush.bf16.msra.mxu2 %v357_v8  ;;  %v356_v15 = vld [vmem:[#allocation5 + $0x10] sm:$0xff]  ;;  %v361_v18 = vld [vmem:[%s568_s7 + $0x18] sm:$0xff]  ;;  %v360_v25 = vld [vmem:[%s568_s7 + $0x10] sm:$0xff] }
  0x11   :  { %99 = vmatpush.bf16.msra.mxu0 %v348_v1  ;;  %259 = vmatpush.bf16.msra.mxu3 %v361_v18  ;;  %v368_v19 = vld [vmem:[%s565_s4] ss:$0 sm:$0xff]  ;;  %v359_v26 = vld [vmem:[%s568_s7 + $0x8] sm:$0xff] }
  0x12   :  { %152 = vmatpush.bf16.msra.mxu1 %v352_v5  ;;  %v358_v27 = vld [vmem:[%s568_s7] sm:$0xff] }
  0x13   :  { %v369_v28 = vld [vmem:[%s567_s6] ss:$0 sm:$0xff] }
  0x14   :  { %296 = vmatmul.msk.bf16.vlgmr.msra.gmra.mxu0 %vm88_vm0, %v67_v4  ;;  %206 = vmatpush.bf16.msra.mxu2 %v356_v15  ;;  %v370_v34 = vld [vmem:[%s569_s8] ss:$0 sm:$0xff] }
  0x15   :  { %260 = vmatpush.bf16.msra.mxu3 %v360_v25 }
  0x16   :  { %153 = vmatpush.bf16.msra.mxu1 %v351_v6 }
  0x18   :  { %207 = vmatpush.bf16.msra.mxu2 %v355_v16 }
  0x19   :  { %261 = vmatpush.bf16.msra.mxu3 %v359_v26 }
  0x1a   :  { %154 = vmatpush.bf16.msra.mxu1 %v350_v7 }
  0x1c   :  { %208 = vmatpush.bf16.msra.mxu2 %v354_v17 }
  0x1d   :  { %262 = vmatpush.bf16.msra.mxu3 %v358_v27 }
  0x91   :  { %v101_v10 = vpop.f32.mrf.mxu0 }
  0x92   :  { %v102_v11 = vadd.f32 %v367_v9, %v101_v10 }
  0x94   :  { %371 = vtanh.f32 %v102_v11 }
  0x99   :  { %v103_v12 = vpop.f32.mrf.mxu0 }
  0x9a   :  { %v372_v13 = vpop.eup %371 }
  0x9b   :  { %v106_v14 = vpack.c.bf16 %v372_v13, %v372_v13 }
  0x9d   :  { %313 = vmatmul.msk.bf16.vlgmr.msra.gmra.mxu1 %vm143_vm1, %v106_v14 }
 0x11a   :  { %v156_v20 = vpop.f32.mrf.mxu1 }
 0x11b   :  { %v157_v21 = vadd.f32 %v368_v19, %v156_v20 }
 0x11d   :  { %373 = vtanh.f32 %v157_v21 }
 0x122   :  { %v158_v22 = vpop.f32.mrf.mxu1 }
 0x123   :  { %v374_v23 = vpop.eup %373 }
 0x124   :  { %v161_v24 = vpack.c.bf16 %v374_v23, %v374_v23 }
 0x126   :  { %330 = vmatmul.msk.bf16.vlgmr.msra.gmra.mxu2 %vm143_vm1, %v161_v24 }
 0x1a9   :  { %v210_v29 = vpop.f32.mrf.mxu2 }
 0x1aa   :  { %v211_v30 = vadd.f32 %v369_v28, %v210_v29 }
 0x1ac   :  { %375 = vtanh.f32 %v211_v30 }
 0x1b1   :  { %v212_v31 = vpop.f32.mrf.mxu2 }
 0x1b2   :  { %v376_v32 = vpop.eup %375 }
 0x1b3   :  { %v215_v33 = vpack.c.bf16 %v376_v32, %v376_v32 }
 0x1b5   :  { %347 = vmatmul.msk.bf16.vlgmr.msra.gmra.mxu3 %vm143_vm1, %v215_v33 }
 0x238   :  { %v264_v35 = vpop.f32.mrf.mxu3 }
 0x239   :  { %v265_v36 = vadd.f32 %v370_v34, %v264_v35 }
 0x23b   :  { %269 = vst.msk [vmem:[#allocation7] sm:$0xff] %vm268_vm2, %v265_v36 }
 0x23c   :  { %280 = dma.vmem_to_hbm [thread:$0]  %s276_s1, 128, %s278_s22, [#allocation4]  }
 0x240   :  { %v266_v37 = vpop.f32.mrf.mxu3 }
 0x241   :  { %453 = dma.done.wait [#allocation4], 128  }
 0x242   :  { %454 = vsyncadd [#allocation4], 4294967168 }
 0x243   :  { %285 = vsyncpa [#allocation3], 1 }
 0x244   :  { %286 = vsyncpa [#allocation6], 1 }
 0x245   :  { %287 = vsyncpa [#allocation4], 1 }

</bundles_post_ra>
